<compile_context>
chip_gen: v5e
topology: v5e:2x2
jax: 0.10.0
libtpu: 0.0.40
codegen_flags: <defaults>
</compile_context>

<pallas_src>
import math

import jax
import jax.numpy as jnp
import numpy as np
from jax.experimental import pallas as pl
from jax.experimental.pallas import tpu as pltpu


_VMEM_LIMIT = 48 << 20            # raised scoped-VMEM ceiling (< v7x 64 MiB)
_RESIDENT_VMEM_BUDGET = 24 << 20  # cap for the resident-feature working set
_STREAM_VMEM_BUDGET = 32 << 20    # cap for the k-tiled streaming working set


def _round_up(x, m):
    return ((x + m - 1) // m) * m


def _itemsize(dtype):
    return np.dtype(dtype).itemsize


def _cast_pad(a, shape, dtype):
    """Fused cast + zero-pad to `shape`; padding skipped when already sized."""
    a = a.astype(dtype)
    pr, pc = shape[0] - a.shape[0], shape[1] - a.shape[1]
    if pr or pc:
        a = jnp.pad(a, ((0, pr), (0, pc)))
    return a


def _pick_row_tile(n_pad):
    """Largest of {512, 256, 128} dividing n_pad that leaves >= 2 row tiles
    (keeps the 'parallel' row axis splittable across v7x's two TCs)."""
    for t in (512, 256, 128):
        if n_pad % t == 0 and n_pad // t >= 2:
            return t
    return 128


def _pick_reduction_tile(n_pad, tm, feat_pad, in_isz, out_isz):
    """Largest reduction tile dividing n_pad whose streaming working set fits
    the budget (bigger tk => fewer f32-accumulator read-modify-write passes)."""
    for tk in (1024, 512, 256, 128):
        if n_pad % tk:
            continue
        ws = (2 * tm * tk * in_isz            # adj tile, double-buffered
              + 2 * tk * feat_pad * in_isz    # feature tile, double-buffered
              + 2 * tm * feat_pad * out_isz   # output tile, double-buffered
              + tm * feat_pad * 4)            # f32 accumulator scratch
        if ws <= _STREAM_VMEM_BUDGET:
            return tk
    return 128


def _resident_fits(n_pad, feat_pad, tm, in_isz, out_isz):
    """Can the whole per-node feature matrix stay VMEM-resident?"""
    need = (2 * n_pad * feat_pad * in_isz     # resident feature slab (2 bufs)
            + 2 * tm * n_pad * in_isz         # adj row strip (2 bufs)
            + 2 * tm * feat_pad * out_isz     # output tile (2 bufs)
            + 2 * feat_pad * 4)               # bias
    return need <= _RESIDENT_VMEM_BUDGET


# ---------------- kernel bodies -------------------------------------------
def _mm_kernel(a_ref, b_ref, o_ref):
    o_ref[...] = jnp.dot(
        a_ref[...], b_ref[...], preferred_element_type=jnp.float32
    ).astype(o_ref.dtype)


def _mm_bias_kernel(a_ref, b_ref, bias_ref, o_ref):
    o_ref[...] = (jnp.dot(a_ref[...], b_ref[...],
                          preferred_element_type=jnp.float32)
                  + bias_ref[...]).astype(o_ref.dtype)


def _agg_stream_kernel(adj_ref, f_ref, o_ref, acc_ref):
    k = pl.program_id(1)

    @pl.when(k == 0)
    def _():
        acc_ref[...] = jnp.zeros_like(acc_ref)

    acc_ref[...] += jnp.dot(adj_ref[...], f_ref[...],
                            preferred_element_type=jnp.float32)

    @pl.when(k == pl.num_programs(1) - 1)
    def _():
        o_ref[...] = acc_ref[...].astype(o_ref.dtype)


def _agg_stream_bias_kernel(adj_ref, f_ref, bias_ref, o_ref, acc_ref):
    k = pl.program_id(1)

    @pl.when(k == 0)
    def _():
        acc_ref[...] = jnp.zeros_like(acc_ref)

    acc_ref[...] += jnp.dot(adj_ref[...], f_ref[...],
                            preferred_element_type=jnp.float32)

    @pl.when(k == pl.num_programs(1) - 1)
    def _():
        # Bias is added exactly once, at reduction finalize.
        o_ref[...] = (acc_ref[...] + bias_ref[...]).astype(o_ref.dtype)


# ---------------- pallas_call drivers --------------------------------------
def _row_matmul(a, b, bias, out_dtype, tm):
    """out row-tile = a row-tile @ b (+ bias).  b (and bias) stay
    VMEM-resident and are fetched exactly once.  Used both for the
    projection (X@W / agg@W) and for the resident-feature aggregation."""
    m, k = a.shape
    ncol = b.shape[1]
    in_specs = [pl.BlockSpec((tm, k), lambda i: (i, 0)),
                pl.BlockSpec((k, ncol), lambda i: (0, 0))]     # resident RHS
    args = [a, b]
    kernel = _mm_kernel
    if bias is not None:
        in_specs.append(pl.BlockSpec((1, ncol), lambda i: (0, 0)))
        args.append(bias)
        kernel = _mm_bias_kernel
    out_isz = _itemsize(out_dtype)
    return pl.pallas_call(
        kernel,
        out_shape=jax.ShapeDtypeStruct((m, ncol), out_dtype),
        grid=(m // tm,),
        in_specs=in_specs,
        out_specs=pl.BlockSpec((tm, ncol), lambda i: (i, 0)),
        compiler_params=pltpu.CompilerParams(
            dimension_semantics=("parallel",),
            vmem_limit_bytes=_VMEM_LIMIT),
        cost_estimate=pl.CostEstimate(
            flops=2 * m * k * ncol,
            transcendentals=0,
            bytes_accessed=(a.dtype.itemsize * m * k
                            + b.dtype.itemsize * k * ncol
                            + out_isz * m * ncol)),
    )(*args)


def _aggregate_stream(adj, feat, bias, out_dtype, tm):
    """out = adj @ feat (+ bias), k-tiled with an f32 VMEM accumulator.
    Fallback for graphs whose feature slab does not fit the VMEM budget."""
    n_pad = adj.shape[0]
    feat_pad = feat.shape[1]
    in_isz = adj.dtype.itemsize
    out_isz = _itemsize(out_dtype)
    tk = _pick_reduction_tile(n_pad, tm, feat_pad, in_isz, out_isz)
    in_specs = [pl.BlockSpec((tm, tk), lambda i, k: (i, k)),        # adj tile
                pl.BlockSpec((tk, feat_pad), lambda i, k: (k, 0))]  # feat tile
    args = [adj, feat]
    kernel = _agg_stream_kernel
    if bias is not None:
        in_specs.append(pl.BlockSpec((1, feat_pad), lambda i, k: (0, 0)))
        args.append(bias)
        kernel = _agg_stream_bias_kernel
    return pl.pallas_call(
        kernel,
        out_shape=jax.ShapeDtypeStruct((n_pad, feat_pad), out_dtype),
        grid=(n_pad // tm, n_pad // tk),
        in_specs=in_specs,
        out_specs=pl.BlockSpec((tm, feat_pad), lambda i, k: (i, 0)),
        scratch_shapes=[pltpu.VMEM((tm, feat_pad), jnp.float32)],
        compiler_params=pltpu.CompilerParams(
            dimension_semantics=("parallel", "arbitrary"),
            vmem_limit_bytes=_VMEM_LIMIT),
        cost_estimate=pl.CostEstimate(
            flops=2 * n_pad * n_pad * feat_pad,
            transcendentals=0,
            bytes_accessed=(in_isz * n_pad * n_pad
                            # feat is re-streamed once per row tile here:
                            + (n_pad // tm) * in_isz * n_pad * feat_pad
                            + out_isz * n_pad * feat_pad)),
    )(*args)


def graph_convolution(x, adj, weight, bias=None, *,
                      compute_dtype=jnp.bfloat16, force_stream=False):
    """GCN layer forward: adj @ (x @ weight) + bias.

    x: [N, in_feat], adj: [N, N] dense normalized adjacency,
    weight: [in_feat, out_feat], bias: [out_feat] or None.
    Returns [N, out_feat] float32.
    """
    n, in_feat = x.shape
    out_feat = weight.shape[1]
    if bias is None:
        bias = jnp.zeros((out_feat,), dtype=jnp.float32)

    in_isz = _itemsize(compute_dtype)
    in_pad = _round_up(in_feat, 128)
    out_pad = _round_up(out_feat, 128)
    n_pad = _round_up(n, 128)
    tm = _pick_row_tile(n_pad)

    # Exact reassociation: adj @ (x @ W) == (adj @ x) @ W.  Run the quadratic
    # aggregation over whichever (padded) feature width is narrower.
    aggregate_first = in_pad <= out_pad
    feat_agg = in_pad if aggregate_first else out_pad
    agg_out_dtype = compute_dtype if aggregate_first else jnp.float32

    xd = _cast_pad(x, (n_pad, in_pad), compute_dtype)
    adjd = _cast_pad(adj, (n_pad, n_pad), compute_dtype)
    wd = _cast_pad(weight, (in_pad, out_pad), compute_dtype)
    bd = _cast_pad(jnp.asarray(bias).reshape(1, -1), (1, out_pad), jnp.float32)

    resident = (not force_stream) and _resident_fits(
        n_pad, feat_agg, tm, in_isz, _itemsize(agg_out_dtype))

    def aggregate(feat, b, out_dtype):
        if resident:
            # Feature slab VMEM-resident: no k grid, no accumulator traffic.
            return _row_matmul(adjd, feat, b, out_dtype, tm)
        return _aggregate_stream(adjd, feat, b, out_dtype, tm)

    if aggregate_first:
        # Phase 1: agg = adj @ x      (narrow feature width, no bias yet).
        agg = aggregate(xd, None, compute_dtype)
        # Phase 2: out = agg @ W + b  (weight + bias VMEM-resident).
        out = _row_matmul(agg, wd, bd, jnp.float32, tm)
    else:
        # Phase 1: support = x @ W    (weight VMEM-resident).
        support = _row_matmul(xd, wd, None, compute_dtype, tm)
        # Phase 2: out = adj @ support + b  (bias added at reduction finalize).
        out = aggregate(support, bd, jnp.float32)

    return out[:n, :out_feat]


# ---------------- parameter init / test helpers ----------------------------
def init_parameters_xavier(key, in_features, out_features, gain=0.02):
    """xavier_normal_(weight, gain=0.02); bias = 0  (matches the module)."""
    std = gain * math.sqrt(2.0 / (in_features + out_features))
    w = std * jax.random.normal(key, (in_features, out_features),
                                dtype=jnp.float32)
    b = jnp.zeros((out_features,), dtype=jnp.float32)
    return w, b


def _make_norm_adj(key, n):
    """Symmetric-normalized dense adjacency D^-1/2 (A+I) D^-1/2."""
    a_raw = (jax.random.uniform(key, (n, n)) > 0.7).astype(jnp.float32)
    a_sym = jnp.maximum(a_raw, a_raw.T) + jnp.eye(n, dtype=jnp.float32)
    deg = jnp.sum(a_sym, axis=1)
    d_inv_sqrt = 1.0 / jnp.sqrt(deg)
    return a_sym * d_inv_sqrt[:, None] * d_inv_sqrt[None, :]


if __name__ == "__main__":
    key = jax.random.PRNGKey(0)
    keys = jax.random.split(key, 10)

    def check(out, ref, name):
        assert jnp.allclose(out, ref, atol=5e-3, rtol=5e-2), f"{name} mismatch"

    # ---- small case (module-scale shapes) ----
    N, IN_F, OUT_F = 16, 32, 8
    x = jax.random.normal(keys[0], (N, IN_F), dtype=jnp.float32)
    adj = _make_norm_adj(keys[1], N)
    w, b = init_parameters_xavier(keys[2], IN_F, OUT_F)
    out = jax.block_until_ready(graph_convolution(x, adj, w, b))
    assert out.shape == (N, OUT_F)
    check(out, adj @ (x @ w) + b, "small")

    # ---- wider-output case: aggregation runs over the narrower input dim ----
    N2, IN2, OUT2 = 600, 64, 200
    x2 = jax.random.normal(keys[3], (N2, IN2), dtype=jnp.float32)
    adj2 = _make_norm_adj(keys[4], N2)
    w2, b2 = init_parameters_xavier(keys[5], IN2, OUT2)
    ref2 = adj2 @ (x2 @ w2) + b2
    out2 = jax.block_until_ready(graph_convolution(x2, adj2, w2, b2))
    assert out2.shape == (N2, OUT2)
    check(out2, ref2, "aggregate-first (resident)")
    out2s = jax.block_until_ready(
        graph_convolution(x2, adj2, w2, b2, force_stream=True))
    check(out2s, ref2, "aggregate-first (streamed k-accumulation)")

    # ---- wider-input case: project first, aggregate second (+bias finalize) --
    N3, IN3, OUT3 = 200, 300, 64
    x3 = jax.random.normal(keys[6], (N3, IN3), dtype=jnp.float32)
    adj3 = _make_norm_adj(keys[7], N3)
    w3, b3 = init_parameters_xavier(keys[8], IN3, OUT3)
    ref3 = adj3 @ (x3 @ w3) + b3
    out3 = jax.block_until_ready(graph_convolution(x3, adj3, w3, b3))
    assert out3.shape == (N3, OUT3)
    check(out3, ref3, "project-first (resident)")
    out3s = jax.block_until_ready(
        graph_convolution(x3, adj3, w3, b3, force_stream=True))
    check(out3s, ref3, "project-first (streamed, bias at finalize)")

    print("KERNEL_OK")
</pallas_src>

<mosaic_0001>
module attributes {stable_mosaic.version = 11 : i64} {
  func.func @_mm_kernel(%arg0: i32, %arg1: memref<128x128xbf16, #tpu.memory_space<vmem>>, %arg2: memref<128x128xbf16, #tpu.memory_space<vmem>>, %arg3: memref<128x128xbf16, #tpu.memory_space<vmem>>) attributes {dimension_semantics = [#tpu.dimension_semantics<parallel>], iteration_bounds = array<i64: 1>, scalar_prefetch = 0 : i64, scratch_operands = 0 : i64, tpu.core_type = #tpu.core_type<tc>, window_params = [{transform_indices = @transform_0, window_bounds = array<i64: 128, 128>}, {pipeline_mode = #tpu.pipeline_mode<synchronous>, transform_indices = @transform_1, window_bounds = array<i64: 128, 128>}, {transform_indices = @transform_2, window_bounds = array<i64: 128, 128>}]} {
    %c0 = arith.constant 0 : index
    %c0_0 = arith.constant 0 : index
    %0 = vector.load %arg1[%c0, %c0_0] : memref<128x128xbf16, #tpu.memory_space<vmem>>, vector<128x128xbf16>
    %c0_1 = arith.constant 0 : index
    %c0_2 = arith.constant 0 : index
    %1 = vector.load %arg2[%c0_1, %c0_2] : memref<128x128xbf16, #tpu.memory_space<vmem>>, vector<128x128xbf16>
    %cst = arith.constant dense<0.000000e+00> : vector<128x128xf32>
    %2 = tpu.matmul %0, %1, %cst {dimension_numbers = #tpu.dot_dimension_numbers<[1], [0], [0], [1], [0, 0, 1, 1], [], []>} : vector<128x128xbf16>, vector<128x128xbf16>, vector<128x128xf32> -> vector<128x128xf32>
    %3 = arith.truncf %2 : vector<128x128xf32> to vector<128x128xbf16>
    %c0_3 = arith.constant 0 : index
    %c0_4 = arith.constant 0 : index
    %4 = vector.load %arg3[%c0_3, %c0_4] : memref<128x128xbf16, #tpu.memory_space<vmem>>, vector<128x128xbf16>
    tpu.vector_store %arg3[%c0_3, %c0_4], %3 {strides = array<i32>} : memref<128x128xbf16, #tpu.memory_space<vmem>>, vector<128x128xbf16>,
    return
  }
  func.func @transform_0(%arg0: i32) -> (i32, i32) {
    %c0_i32 = arith.constant 0 : i32
    %c0_i32_0 = arith.constant 0 : i32
    return %arg0, %c0_i32 : i32, i32
  }
  func.func @transform_1(%arg0: i32) -> (i32, i32) {
    %c0_i32 = arith.constant 0 : i32
    %c0_i32_0 = arith.constant 0 : i32
    %c0_i32_1 = arith.constant 0 : i32
    return %c0_i32, %c0_i32_0 : i32, i32
  }
  func.func @transform_2(%arg0: i32) -> (i32, i32) {
    %c0_i32 = arith.constant 0 : i32
    %c0_i32_0 = arith.constant 0 : i32
    return %arg0, %c0_i32 : i32, i32
  }
}

</mosaic_0001>

<bundles_post_ra>
// kernel: tpu_custom_call.1
= control target key start
LH: loop header
LB: loop body
LE: loop exit
PB: predicated region body
PF: predicated region fallthrough
CT: control target
= control target key end

     0   :  { %7 = vsyncpa [#allocation3], 0  ;;  %s545_s0 = inlined_call_operand.hbm [shape: bf16[128,128], index: 0, kind: input, shape index: {}]   ;;  %s546_s1 = inlined_call_operand.hbm [shape: bf16[128,128], index: 1, kind: input, shape index: {}]   ;;  %s547_s2 = inlined_call_operand.hbm [shape: bf16[128,128], index: 2, kind: output, shape index: {}]  }
   0x1   :  { %8 = vsyncpa [#allocation6], 0 }
   0x2   :  { %9 = vsyncpa [#allocation4], 0  ;;  %s14_s11 = sshll.u32 %s545_s0, 4  ;;  %s507_s12 = smov [#allocation2]   ;;  %s15_s11 = int_to_ptr.hbm [resolvable:$true] %s14_s11 }
   0x3   :  { %s16_s13 = sshll.u32 %s507_s12, 4  ;;  %s27_s16 = sshll.u32 %s546_s1, 4  ;;  %s17_s13 = int_to_ptr.vmem [resolvable:$true] %s16_s13  ;;  %s28_s16 = int_to_ptr.hbm [resolvable:$true] %s27_s16 }
   0x4   :  { %s508_s17 = smov 64   ;;  %s509_s18 = smov 4  }
   0x5   :  { %22 = dma.hbm_to_vmem [thread:$0]  %s15_s11, 1024, %s17_s13, [#allocation3], %s508_s17, %s508_s17, %s509_s18  }
   0x6   :  { %s510_s19 = smov [#allocation5]  }
   0x7   :  { %s29_s20 = sshll.u32 %s510_s19, 4  ;;  %s30_s20 = int_to_ptr.vmem [resolvable:$true] %s29_s20 }
   0x8   :  { %35 = dma.hbm_to_vmem [thread:$0]  %s28_s16, 1024, %s30_s20, [#allocation6], %s508_s17, %s508_s17, %s509_s18  }
   0x9   :  { %501 = dma.done.wait [#allocation3], 1024  }
   0xa   :  { %502 = vsyncadd [#allocation3], 4294966272 }
   0xb   :  { %503 = dma.done.wait [#allocation6], 1024  }
   0xc   :  { %504 = vsyncadd [#allocation6], 4294966272  ;;  %v352_v0 = vld [vmem:[#allocation5 + $0x38] sm:$0xff]  ;;  %v351_v1 = vld [vmem:[#allocation5 + $0x30] sm:$0xff]  ;;  %s511_s0 = smov [#allocation7]   ;;  %s259_s23 = sshll.u32 %s547_s2, 4  ;;  %s260_s23 = int_to_ptr.hbm [resolvable:$true] %s259_s23 }
   0xd   :  { %172 = vmatpush.bf16.msra.mxu0 %v352_v0  ;;  %400 = vmatpush.bf16.msra.mxu1 %v352_v0  ;;  %v350_v2 = vld [vmem:[#allocation5 + $0x28] sm:$0xff]  ;;  %v349_v3 = vld [vmem:[#allocation5 + $0x20] sm:$0xff]  ;;  %v348_v4 = vld [vmem:[#allocation5 + $0x18] sm:$0xff]  ;;  %s257_s1 = sshll.u32 %s511_s0, 4  ;;  %s258_s1 = int_to_ptr.vmem [resolvable:$true] %s257_s1 }
   0xe   :  { %401 = vmatpush.bf16.msra.mxu2 %v352_v0  ;;  %402 = vmatpush.bf16.msra.mxu3 %v352_v0  ;;  %v347_v5 = vld [vmem:[#allocation5 + $0x10] sm:$0xff]  ;;  %v346_v6 = vld [vmem:[#allocation5 + $0x8] sm:$0xff]  ;;  %v345_v7 = vld [vmem:[#allocation5] sm:$0xff] }
   0xf   :  { %v337_v8 = vld [vmem:[#allocation2] sm:$0xff]  ;;  %v339_v9 = vld [vmem:[#allocation2 + $0x10] sm:$0xff]  ;;  %v338_v12 = vld [vmem:[#allocation2 + $0x8] sm:$0xff] }
  0x10   :  { %v341_v10 = vld [vmem:[#allocation2 + $0x20] sm:$0xff]  ;;  %v343_v11 = vld [vmem:[#allocation2 + $0x30] sm:$0xff]  ;;  %v340_v13 = vld [vmem:[#allocation2 + $0x18] sm:$0xff] }
  0x11   :  { %173 = vmatpush.bf16.msra.mxu0 %v351_v1  ;;  %403 = vmatpush.bf16.msra.mxu1 %v351_v1  ;;  %v342_v14 = vld [vmem:[#allocation2 + $0x28] sm:$0xff]  ;;  %v344_v15 = vld [vmem:[#allocation2 + $0x38] sm:$0xff] }
  0x12   :  { %404 = vmatpush.bf16.msra.mxu2 %v351_v1  ;;  %405 = vmatpush.bf16.msra.mxu3 %v351_v1 }
  0x15   :  { %174 = vmatpush.bf16.msra.mxu0 %v350_v2  ;;  %406 = vmatpush.bf16.msra.mxu1 %v350_v2 }
  0x16   :  { %407 = vmatpush.bf16.msra.mxu2 %v350_v2  ;;  %408 = vmatpush.bf16.msra.mxu3 %v350_v2 }
  0x19   :  { %175 = vmatpush.bf16.msra.mxu0 %v349_v3  ;;  %409 = vmatpush.bf16.msra.mxu1 %v349_v3 }
  0x1a   :  { %410 = vmatpush.bf16.msra.mxu2 %v349_v3  ;;  %411 = vmatpush.bf16.msra.mxu3 %v349_v3 }
  0x1d   :  { %176 = vmatpush.bf16.msra.mxu0 %v348_v4  ;;  %412 = vmatpush.bf16.msra.mxu1 %v348_v4 }
  0x1e   :  { %413 = vmatpush.bf16.msra.mxu2 %v348_v4  ;;  %414 = vmatpush.bf16.msra.mxu3 %v348_v4 }
  0x21   :  { %177 = vmatpush.bf16.msra.mxu0 %v347_v5  ;;  %415 = vmatpush.bf16.msra.mxu1 %v347_v5 }
  0x22   :  { %416 = vmatpush.bf16.msra.mxu2 %v347_v5  ;;  %417 = vmatpush.bf16.msra.mxu3 %v347_v5 }
  0x25   :  { %178 = vmatpush.bf16.msra.mxu0 %v346_v6  ;;  %418 = vmatpush.bf16.msra.mxu1 %v346_v6 }
  0x26   :  { %419 = vmatpush.bf16.msra.mxu2 %v346_v6  ;;  %420 = vmatpush.bf16.msra.mxu3 %v346_v6 }
  0x29   :  { %179 = vmatpush.bf16.msra.mxu0 %v345_v7  ;;  %421 = vmatpush.bf16.msra.mxu1 %v345_v7 }
  0x2a   :  { %422 = vmatpush.bf16.msra.mxu2 %v345_v7  ;;  %423 = vmatpush.bf16.msra.mxu3 %v345_v7 }
  0x2c   :  { %180 = vmatmul.bf16.vlgmr.msra.gmra.mxu0 %v337_v8  ;;  %190 = vmatmul.bf16.vlgmr.msra.gmra.mxu1 %v339_v9 }
  0x2d   :  { %200 = vmatmul.bf16.vlgmr.msra.gmra.mxu2 %v341_v10  ;;  %210 = vmatmul.bf16.vlgmr.msra.gmra.mxu3 %v343_v11 }
  0x3c   :  { %185 = vmatmul.bf16.gmra.mxu0 %v338_v12  ;;  %195 = vmatmul.bf16.gmra.mxu1 %v340_v13 }
  0x3d   :  { %205 = vmatmul.bf16.gmra.mxu2 %v342_v14  ;;  %215 = vmatmul.bf16.gmra.mxu3 %v344_v15 }
  0xa9   :  { %v181_v16 = vpop.f32.mrf.mxu0  ;;  %v191_v17 = vpop.f32.mrf.mxu1 }
  0xb0   :  { %v201_v18 = vpop.f32.mrf.mxu2  ;;  %v211_v19 = vpop.f32.mrf.mxu3 }
  0xb1   :  { %v183_v20 = vpop.f32.mrf.mxu0  ;;  %v193_v21 = vpop.f32.mrf.mxu1 }
  0xb2   :  { %v356_v22 = vpack.c.bf16 %v183_v20, %v181_v16  ;;  %v366_v23 = vpack.c.bf16 %v193_v21, %v191_v17 }
  0xb4   :  { %357 = vst [vmem:[#allocation7] sm:$0xff] %v356_v22  }
  0xb5   :  { %394 = vst [vmem:[#allocation7 + $0x10] sm:$0xff] %v366_v23  }
  0xb8   :  { %v203_v24 = vpop.f32.mrf.mxu2  ;;  %v213_v25 = vpop.f32.mrf.mxu3 }
  0xb9   :  { %v376_v26 = vpack.c.bf16 %v203_v24, %v201_v18  ;;  %v386_v27 = vpack.c.bf16 %v213_v25, %v211_v19  ;;  %v186_v28 = vpop.f32.mrf.mxu0  ;;  %v196_v29 = vpop.f32.mrf.mxu1 }
  0xbb   :  { %396 = vst [vmem:[#allocation7 + $0x20] sm:$0xff] %v376_v26  }
  0xbc   :  { %398 = vst [vmem:[#allocation7 + $0x30] sm:$0xff] %v386_v27  }
  0xc0   :  { %v206_v30 = vpop.f32.mrf.mxu2  ;;  %v216_v31 = vpop.f32.mrf.mxu3 }
  0xc1   :  { %v188_v32 = vpop.f32.mrf.mxu0  ;;  %v198_v33 = vpop.f32.mrf.mxu1 }
  0xc2   :  { %v361_v34 = vpack.c.bf16 %v188_v32, %v186_v28  ;;  %v371_v35 = vpack.c.bf16 %v198_v33, %v196_v29 }
  0xc4   :  { %393 = vst [vmem:[#allocation7 + $0x8] sm:$0xff] %v361_v34  }
  0xc5   :  { %395 = vst [vmem:[#allocation7 + $0x18] sm:$0xff] %v371_v35  }
  0xc8   :  { %v208_v36 = vpop.f32.mrf.mxu2  ;;  %v218_v37 = vpop.f32.mrf.mxu3 }
  0xc9   :  { %v381_v38 = vpack.c.bf16 %v208_v36, %v206_v30  ;;  %v391_v39 = vpack.c.bf16 %v218_v37, %v216_v31 }
  0xcb   :  { %397 = vst [vmem:[#allocation7 + $0x28] sm:$0xff] %v381_v38  }
  0xcc   :  { %399 = vst [vmem:[#allocation7 + $0x38] sm:$0xff] %v391_v39  }
  0xcd   :  { %265 = dma.vmem_to_hbm [thread:$0]  %s258_s1, 1024, %s260_s23, [#allocation4], %s508_s17, %s508_s17, %s509_s18  }
  0xce   :  { %505 = dma.done.wait [#allocation4], 1024  }
  0xcf   :  { %506 = vsyncadd [#allocation4], 4294966272 }
  0xd0   :  { %270 = vsyncpa [#allocation3], 1 }
  0xd1   :  { %271 = vsyncpa [#allocation6], 1 }
  0xd2   :  { %272 = vsyncpa [#allocation4], 1 }

</bundles_post_ra>
